<compile_context>
chip_gen: v7x
topology: tpu7x:2x2x1
jax: 0.10.0
libtpu: 0.0.40
codegen_flags: <defaults>
</compile_context>

<pallas_src>
import jax
import jax.numpy as jnp
from jax.experimental import pallas as pl
from jax.experimental.pallas import tpu as pltpu


def _make_kernel(seq_len: int):
    inv_s = 1.0 / float(seq_len)

    def fused_kernel(x_ref, w_ref, b_ref, scores_ref, loss_ref):
        """One grid step == one batch row b of the (B, G) score matrix.

        x_ref      : (1, G, S, H) bf16 VMEM   hidden states of the G group docs
        w_ref      : (1, H)       bf16 VMEM   classifier weight (original, untiled)
        b_ref      : (1,)         f32  SMEM   classifier bias
        scores_ref : (1, G, 1)    f32  VMEM   logits / scores for row b
        loss_ref   : (1, 1, 1)    f32  VMEM   per-row CE loss (target class 0)
        """
        # Upcast after load: bf16 only pays for the HBM->VMEM bytes.
        x = x_ref[0].astype(jnp.float32)                 # (G, S, H)
        w = w_ref[...].astype(jnp.float32)               # (1, H)

        # Pool-then-project: sublane reduce over S (1/S folded here), then a
        # single H-length VPU multiply + lane reduce.  No MXU (N=1 head).
        pooled = jnp.sum(x, axis=1) * inv_s              # (G, H)
        scores = jnp.sum(pooled * w, axis=-1, keepdims=True) + b_ref[0]  # (G, 1)
        scores_ref[0] = scores

        # CrossEntropyLoss row term with target class 0: lse(scores) - scores[0].
        m = jnp.max(scores, axis=0, keepdims=True)                        # (1, 1)
        lse = m + jnp.log(jnp.sum(jnp.exp(scores - m), axis=0, keepdims=True))
        loss_ref[0] = lse - scores[0:1, :]                                # (1, 1)

    return fused_kernel


def cross_encoder_forward(hidden, w, b, per_device_train_batch_size, train_group_size):
    """hidden: (B*G, S, H), w: (H, 1), b: (1,) -> (scalar loss, logits (B*G, 1))."""
    BG, S, H = hidden.shape
    B = per_device_train_batch_size
    G = train_group_size
    assert BG == B * G, "backbone output rows must equal B * G"

    # Free, row-major views / tiny dtype casts (no data-inflating wrapper ops).
    x4 = hidden.reshape(B, G, S, H).astype(jnp.bfloat16)
    w_row = w.reshape(1, H).astype(jnp.bfloat16)
    b = b.astype(jnp.float32)

    scores3, row_loss = pl.pallas_call(
        _make_kernel(S),
        out_shape=(
            jax.ShapeDtypeStruct((B, G, 1), jnp.float32),   # scores / logits
            jax.ShapeDtypeStruct((B, 1, 1), jnp.float32),   # per-row CE loss
        ),
        grid_spec=pltpu.PrefetchScalarGridSpec(
            num_scalar_prefetch=0,
            grid=(B,),                                      # one score row per step
            in_specs=[
                pl.BlockSpec((1, G, S, H), lambda i: (i, 0, 0, 0)),  # activations
                pl.BlockSpec((1, H), lambda i: (0, 0)),              # head weight
                pl.BlockSpec(memory_space=pltpu.SMEM),               # bias scalar
            ],
            out_specs=(
                pl.BlockSpec((1, G, 1), lambda i: (i, 0, 0)),
                pl.BlockSpec((1, 1, 1), lambda i: (i, 0, 0)),
            ),
        ),
        compiler_params=pltpu.CompilerParams(
            dimension_semantics=("parallel",),              # v7x: split B over 2 TCs
            vmem_limit_bytes=32 * 1024 * 1024,              # safe on v5e/v6e/v7x
        ),
    )(x4, w_row, b)

    # scores = logits.view(B, G)  <=>  logits = scores.reshape(B*G, 1)  (free view)
    logits = scores3.reshape(BG, 1)
    # CrossEntropyLoss(reduction='mean') over the B rows.
    loss = jnp.mean(row_loss)
    return loss, logits


def reference_forward(hidden, w, b, B, G):
    xf = hidden.astype(jnp.float32)
    wf = w.astype(jnp.float32)
    S = hidden.shape[1]
    pooled = jnp.sum(xf, axis=1) * (1.0 / S)                         # (B*G, H)
    logits = jnp.sum(pooled * wf[:, 0][None, :], axis=-1, keepdims=True) + b[0]
    scores = logits.reshape(B, G)
    log_probs = jax.nn.log_softmax(scores, axis=-1)
    loss = -jnp.mean(log_probs[:, 0])                                # target_label == 0
    return loss, logits


# TODO(synk): the HF PreTrainedModel backbone (full transformer producing
# SequenceClassifierOutput) is replaced by a synthetic mean-pool + linear head;
# gradient_checkpointing_enable has no forward-pass equivalent.

if __name__ == "__main__":
    # Module hyper-parameters (small, consistent with the forward pass):
    B = 2      # per_device_train_batch_size
    G = 8      # train_group_size
    S = 8      # sequence length
    H = 32     # hidden size

    key = jax.random.PRNGKey(0)
    kx, kw, kb = jax.random.split(key, 3)

    # Deterministic synthetic inputs / parameters (bf16 activations + weight,
    # as the HBM-resident dtype; compute is f32 in both kernel and reference).
    hidden = jax.random.normal(kx, (B * G, S, H), dtype=jnp.float32).astype(jnp.bfloat16)
    w = (jax.random.normal(kw, (H, 1), dtype=jnp.float32) * 0.1).astype(jnp.bfloat16)
    b = jax.random.normal(kb, (1,), dtype=jnp.float32) * 0.1

    loss, logits = cross_encoder_forward(hidden, w, b, B, G)
    jax.block_until_ready((loss, logits))

    ref_loss, ref_logits = reference_forward(hidden, w, b, B, G)
    assert logits.shape == (B * G, 1)
    assert jnp.allclose(logits, ref_logits, atol=1e-5, rtol=1e-5), "logits mismatch"
    assert jnp.allclose(loss, ref_loss, atol=1e-5, rtol=1e-5), "loss mismatch"

    print("KERNEL_OK")
</pallas_src>

<mosaic_0001>
module attributes {stable_mosaic.version = 11 : i64} {
  func.func @fused_kernel(%arg0: i32, %arg1: memref<1x8x8x32xbf16, #tpu.memory_space<vmem>>, %arg2: memref<1x32xbf16, #tpu.memory_space<vmem>>, %arg3: memref<1xf32, #tpu.memory_space<smem>>, %arg4: memref<1x8x1xf32, #tpu.memory_space<vmem>>, %arg5: memref<1x1x1xf32, #tpu.memory_space<vmem>>) attributes {dimension_semantics = [#tpu.dimension_semantics<parallel>], iteration_bounds = array<i64: 2>, scalar_prefetch = 0 : i64, scratch_operands = 0 : i64, tpu.core_type = #tpu.core_type<tc>, window_params = [{transform_indices = @transform_0, window_bounds = array<i64: 1, 8, 8, 32>}, {pipeline_mode = #tpu.pipeline_mode<synchronous>, transform_indices = @transform_1, window_bounds = array<i64: 1, 32>}, {transform_indices = @transform_2, window_bounds = array<i64: 1>}, {transform_indices = @transform_3, window_bounds = array<i64: 1, 8, 1>}, {transform_indices = @transform_4, window_bounds = array<i64: 1, 1, 1>}]} {
    %c0 = arith.constant 0 : index
    %c0_0 = arith.constant 0 : index
    %c0_1 = arith.constant 0 : index
    %c0_2 = arith.constant 0 : index
    %0 = vector.load %arg1[%c0, %c0_0, %c0_1, %c0_2] : memref<1x8x8x32xbf16, #tpu.memory_space<vmem>>, vector<1x8x8x32xbf16>
    %1 = vector.shape_cast %0 : vector<1x8x8x32xbf16> to vector<8x8x32xbf16>
    %2 = arith.extf %1 : vector<8x8x32xbf16> to vector<8x8x32xf32>
    %c0_3 = arith.constant 0 : index
    %c0_4 = arith.constant 0 : index
    %3 = vector.load %arg2[%c0_3, %c0_4] : memref<1x32xbf16, #tpu.memory_space<vmem>>, vector<1x32xbf16>
    %4 = arith.extf %3 : vector<1x32xbf16> to vector<1x32xf32>
    %cst = arith.constant dense<0.000000e+00> : vector<8x32xf32>
    %5 = vector.multi_reduction <add>, %2, %cst [1] : vector<8x8x32xf32> to vector<8x32xf32>
    %cst_5 = arith.constant 1.250000e-01 : f32
    %6 = vector.broadcast %cst_5 : f32 to vector<8x32xf32>
    %7 = arith.mulf %5, %6 : vector<8x32xf32>
    %8 = vector.broadcast %4 : vector<1x32xf32> to vector<8x32xf32>
    %9 = arith.mulf %7, %8 : vector<8x32xf32>
    %cst_6 = arith.constant dense<0.000000e+00> : vector<8xf32>
    %10 = vector.multi_reduction <add>, %9, %cst_6 [1] : vector<8x32xf32> to vector<8xf32>
    %11 = vector.shape_cast %10 : vector<8xf32> to vector<8x1xf32>
    %c0_7 = arith.constant 0 : index
    %12 = memref.load %arg3[%c0_7] : memref<1xf32, #tpu.memory_space<smem>>
    %13 = vector.broadcast %12 : f32 to vector<8x1xf32>
    %14 = arith.addf %11, %13 : vector<8x1xf32>
    %c0_8 = arith.constant 0 : index
    %c0_9 = arith.constant 0 : index
    %c0_10 = arith.constant 0 : index
    %15 = vector.load %arg4[%c0_8, %c0_9, %c0_10] : memref<1x8x1xf32, #tpu.memory_space<vmem>>, vector<1x8x1xf32>
    %16 = vector.shape_cast %15 : vector<1x8x1xf32> to vector<8x1xf32>
    %17 = vector.shape_cast %14 : vector<8x1xf32> to vector<1x8x1xf32>
    tpu.vector_store %arg4[%c0_8, %c0_9, %c0_10], %17 {strides = array<i32>} : memref<1x8x1xf32, #tpu.memory_space<vmem>>, vector<1x8x1xf32>,
    %cst_11 = arith.constant dense<0xFF800000> : vector<1xf32>
    %18 = vector.multi_reduction <maximumf>, %14, %cst_11 [0] : vector<8x1xf32> to vector<1xf32>
    %19 = vector.shape_cast %18 : vector<1xf32> to vector<1x1xf32>
    %20 = vector.broadcast %19 : vector<1x1xf32> to vector<8x1xf32>
    %21 = arith.subf %14, %20 : vector<8x1xf32>
    %22 = math.exp %21 : vector<8x1xf32>
    %cst_12 = arith.constant dense<0.000000e+00> : vector<1xf32>
    %23 = vector.multi_reduction <add>, %22, %cst_12 [0] : vector<8x1xf32> to vector<1xf32>
    %24 = vector.shape_cast %23 : vector<1xf32> to vector<1x1xf32>
    %25 = math.log %24 : vector<1x1xf32>
    %26 = arith.addf %19, %25 : vector<1x1xf32>
    %27 = vector.extract_strided_slice %14 {offsets = [0, 0], sizes = [1, 1], strides = [1, 1]} : vector<8x1xf32> to vector<1x1xf32>
    %28 = arith.subf %26, %27 : vector<1x1xf32>
    %c0_13 = arith.constant 0 : index
    %c0_14 = arith.constant 0 : index
    %c0_15 = arith.constant 0 : index
    %29 = vector.load %arg5[%c0_13, %c0_14, %c0_15] : memref<1x1x1xf32, #tpu.memory_space<vmem>>, vector<1x1x1xf32>
    %30 = vector.shape_cast %29 : vector<1x1x1xf32> to vector<1x1xf32>
    %31 = vector.shape_cast %28 : vector<1x1xf32> to vector<1x1x1xf32>
    tpu.vector_store %arg5[%c0_13, %c0_14, %c0_15], %31 {strides = array<i32>} : memref<1x1x1xf32, #tpu.memory_space<vmem>>, vector<1x1x1xf32>,
    return
  }
  func.func @transform_0(%arg0: i32) -> (i32, i32, i32, i32) {
    %c0_i32 = arith.constant 0 : i32
    %c0_i32_0 = arith.constant 0 : i32
    %c0_i32_1 = arith.constant 0 : i32
    %c0_i32_2 = arith.constant 0 : i32
    return %arg0, %c0_i32, %c0_i32_0, %c0_i32_1 : i32, i32, i32, i32
  }
  func.func @transform_1(%arg0: i32) -> (i32, i32) {
    %c0_i32 = arith.constant 0 : i32
    %c0_i32_0 = arith.constant 0 : i32
    %c0_i32_1 = arith.constant 0 : i32
    return %c0_i32, %c0_i32_0 : i32, i32
  }
  func.func @transform_2(%arg0: i32) -> i32 {
    %c0_i32 = arith.constant 0 : i32
    %c0_i32_0 = arith.constant 0 : i32
    return %c0_i32 : i32
  }
  func.func @transform_3(%arg0: i32) -> (i32, i32, i32) {
    %c0_i32 = arith.constant 0 : i32
    %c0_i32_0 = arith.constant 0 : i32
    %c0_i32_1 = arith.constant 0 : i32
    return %arg0, %c0_i32, %c0_i32_0 : i32, i32, i32
  }
  func.func @transform_4(%arg0: i32) -> (i32, i32, i32) {
    %c0_i32 = arith.constant 0 : i32
    %c0_i32_0 = arith.constant 0 : i32
    %c0_i32_1 = arith.constant 0 : i32
    return %arg0, %c0_i32, %c0_i32_0 : i32, i32, i32
  }
}

</mosaic_0001>

<bundles_post_ra>
// kernel: tpu_custom_call.1
= control target key start
LH: loop header
LB: loop body
LE: loop exit
PB: predicated region body
PF: predicated region fallthrough
CT: control target
= control target key end

     0   :  { %s779_s0 = inlined_call_operand.hbm [shape: bf16[2,8,8,32], index: 0, kind: input, shape index: {}]   ;;  %s780_s1 = inlined_call_operand.vmem [shape: bf16[1,32], index: 1, kind: input, shape index: {}]   ;;  %s781_s2 = inlined_call_operand.<no memory space> [shape: f32[1], index: 2, kind: input, shape index: {}]   ;;  %s782_s3 = inlined_call_operand.vmem [shape: f32[2,8,1], index: 3, kind: output, shape index: {0}]   ;;  %s783_s4 = inlined_call_operand.vmem [shape: f32[2,1,1], index: 4, kind: output, shape index: {1}]  }
   0x1   :  { %10 = sst [smem:[#allocation2]] %s781_s2 }
   0x2   :  { %11 = vsyncpa [#allocation4], 0 }
   0x3   :  { %13 = vsyncpa [#allocation4 + $0x1], 0  ;;  %s643_s17 = smov 0   ;;  %s645_s18 = smov 0  }
   0x4   :  { %s647_s19 = smov 0   ;;  %s649_s20 = smov 0  }
   0x5 LB: > { %s662_s2 = sadd.s32 4294967295, %s610_s20   ;;  %s665_s21 = sadd.s32 1, %s610_s20   ;;  %s610_s20 = sphi %s649_s20, %s790_s20   ;;  %s606_s19 = sphi %s647_s19, %s789_s19   ;;  %s602_s18 = sphi %s645_s18, %s788_s18   ;;  %s598_s17 = sphi %s643_s17, %s787_s17  }
   0x6   : > { %s23_s22 = ssub.s32 %s610_s20, %s665_s21  ;;  %s26_s23 = sadd.s32 1, %s606_s19 }
   0x7   : > { %p24_p0 = scmp.eq.s32.totalorder %s23_s22, 0  ;;  %p33_p1 = scmp.ne.s32.totalorder %s606_s19, %s602_s18 }
   0x8   : > { %p34_p2 = scmp.eq.s32.totalorder %s610_s20, 0  ;;  %p39_p3 = scmp.ne.s32.totalorder %s602_s18, %s598_s17 }
   0x9   : > { %s675_s24 = scalar_select %p24_p0, %s606_s19, %s26_s23  }
   0xa   : > { %p35_p4 = por %p34_p2, %p33_p1  ;;  %p40_p5 = scmp.eq.s32.totalorder %s662_s2, 0 }
   0xb   : > { %p507_p6 = scmp.lt.s32.totalorder %s610_s20, 2  ;;  %s163_s26 = sand.u32 1, %s606_s19  }
   0xc   : > { %p679_p7 = por %p40_p5, %p39_p3  ;;  %s473_s27 = sshll.u32 %s163_s26, 5 }
   0xd   : > { %s481_s28 = sshll.u32 %s610_s20, 9  ;;  %s167_s6 = scalar_lea.vmem [#allocation3], %s473_s27 }
   0xe   : > { %s688_s5 = scalar_lea.hbm %s779_s0, %s481_s28  ;;  %s174_s7 = sshll.u32 %s167_s6, 4  ;;  %s690_s7 = int_to_ptr.vmem [resolvable:$true] %s174_s7 }
   0xf   : > { %p692_p8 = pnand %p507_p6, %p35_p4  ;;  %s697_s9 = scalar_lea.sflag [#allocation4], %s163_s26 }
  0x10   : > { %s546_s10 = scalar_lea.hbm %s688_s5, 512  ;;  %s551_s13 = scalar_lea.hbm %s779_s0, 1024 }
  0x11   : > { %p547_p10 = scmp.ne.s32.totalorder %s688_s5, %s546_s10  ;;  %p548_p11 = pneg %p692_p8 }
  0x12   : > { %p552_p0 = scmp.lt.u32.totalorder %s688_s5, %s779_s0  ;;  %p553_p1 = scmp.lt.u32.totalorder %s551_s13, %s546_s10 }
  0x13   : > { %p549_p12 = pnand %p548_p11, %p547_p10  ;;  %p555_p3 = scmp.lt.u32.totalorder %s546_s10, %s688_s5 }
  0x14   : > { %p554_p2 = por %p553_p1, %p552_p0 }
  0x15   : > { %p550_p13 = pneg %p549_p12 }
  0x16   : > { %p556_p4 = por %p555_p3, %p554_p2 }
  0x18   : > { %p557_p5 = pnand %p556_p4, %p550_p13 }
  0x1a   : > { %560 = shalt.err (!%p557_p5)
}
  0x1b   : > { %s561_s16 = scalar_lea.vmem %s690_s7, 512  ;;  %s612_s17 = smov [#allocation3]  }
  0x1c   : > { %p562_p6 = scmp.ne.s32.totalorder %s690_s7, %s561_s16  ;;  %s566_s22 = sshll.u32 %s612_s17, 4  ;;  %s567_s22 = int_to_ptr.vmem [resolvable:$false] %s566_s22 }
  0x1d   : > { %s568_s23 = scalar_lea.vmem %s567_s22, 1024  ;;  %p569_p9 = scmp.lt.s32.totalorder %s690_s7, %s567_s22 }
  0x1e   : > { %p564_p10 = pnand %p562_p6, %p548_p11  ;;  %p570_p0 = scmp.lt.s32.totalorder %s568_s23, %s561_s16 }
  0x20   : > { %p565_p12 = pneg %p564_p10  ;;  %p571_p1 = por %p570_p0, %p569_p9 }
  0x22   : > { %p572_p2 = pnand %p571_p1, %p565_p12 }
  0x24   : > { %575 = shalt.err (!%p572_p2)
}
  0x25   : > { %s613_s26 = smov 64   ;;  %s614_s27 = smov 4  }
  0x26   : > { %506 = dma.hbm_to_vmem [thread:$0]  (!%p692_p8), %s688_s5, 512, %s690_s7, %s697_s9, %s613_s26, %s613_s26, %s614_s27  }
  0x27   : > { %p182_p11 = scmp.lt.s32.totalorder %s610_s20, 3  ;;  %p786_p13 = scmp.ge.s32.totalorder %s610_s20, 1 }
  0x29   : > { %p183_p3 = pnand %p786_p13, %p182_p11 }
  0x2a   : > { %s188_s28 = sand.u32 (!%p183_p3), 1, %s602_s18  }
  0x2b   : > { %186 = sbr.rel (%p183_p3) target bundleno = 284 (0x11c), region = 32  ;;  %s477_s29 = sshll.u32 (!%p183_p3), %s188_s28, 5 }
  0x2c   : > { %s189_s30 = scalar_lea.sflag (!%p183_p3), [#allocation4], %s188_s28  ;;  %s192_s6 = scalar_lea.vmem (!%p183_p3), [#allocation3], %s477_s29 }
  0x32   : > { %593 = dma.done.wait (%p679_p7), %s189_s30, 512  }
  0x33   : > { %595 = vsyncadd (%p679_p7), %s189_s30, 4294966784  ;;  %v309_v0 = vlaneseq  ;;  %v483_v2 = vld [vmem:[%s192_s6] sm:$0xff]   ;;  %v498_v3 = vld [vmem:[%s192_s6 + $0x8] sm:$0xff]   ;;  %vm244_vm0 = vcmask 261120   ;;  %vm330_vm1 = vcmask 1041409   ;;  %vm333_vm2 = vcmask 1042434  }
  0x34   : > { %v499_v4 = vld [vmem:[%s192_s6 + $0x10] sm:$0xff]   ;;  %v484_v6 = vunpack.c.l.bf16 %v483_v2  ;;  %v485_v7 = vunpack.c.h.bf16 %v483_v2  ;;  %v488_v8 = vunpack.c.l.bf16 %v498_v3  ;;  %v489_v9 = vunpack.c.h.bf16 %v498_v3  ;;  %v500_v10 = vld [vmem:[%s192_s6 + $0x18] sm:$0xff]   ;;  %v739_v11 = vld [vmem:[%s780_s1] sm:$0x1]  ;;  %p219_p7 = scmp.lt.s32.totalorder %s662_s2, 1  ;;  %s354_s25 = sld [smem:[#allocation2]] }
  0x35   : > { %v733_v1 = vshrl.u32 %v309_v0, 7  ;;  %v492_v12 = vunpack.c.l.bf16 %v499_v4  ;;  %v493_v13 = vunpack.c.h.bf16 %v499_v4  ;;  %v496_v14 = vunpack.c.l.bf16 %v500_v10 }
  0x36   : > { %v497_v15 = vunpack.c.h.bf16 %v500_v10  ;;  %v243_v16 = vunpack.c.l.bf16 %v739_v11  ;;  %v245_v17 = vsel %vm244_vm0, %v484_v6, 0.0  ;;  %v252_v18 = vsel %vm244_vm0, %v485_v7, 0.0  ;;  %s792_s2 = smov (!%p219_p7, %s662_s2), 1 }
  0x37   : > { %v311_v5 = vsub.s32 0, %v733_v1  ;;  %v259_v19 = vsel %vm244_vm0, %v488_v8, 0.0  ;;  %v246_v20 = vrot.slane %v245_v17, 4  ;;  %v253_v21 = vrot.slane %v252_v18, 4  ;;  %s478_s7 = sshll.u32 %s792_s2, 3  ;;  %s225_s13 = scalar_lea.vmem %s783_s4, %s792_s2 }
  0x38   : > { %v260_v22 = vrot.slane %v259_v19, 4  ;;  %v266_v23 = vsel %vm244_vm0, %v489_v9, 0.0  ;;  %v273_v25 = vsel %vm244_vm0, %v492_v12, 0.0  ;;  %v280_v26 = vsel %vm244_vm0, %v493_v13, 0.0  ;;  %s222_s10 = scalar_lea.vmem %s782_s3, %s478_s7 }
  0x39   : > { %v267_v24 = vrot.slane %v266_v23, 4  ;;  %v287_v27 = vsel %vm244_vm0, %v496_v14, 0.0  ;;  %v247_v28 = vadd.f32 %v246_v20, %v245_v17  ;;  %v254_v29 = vadd.f32 %v253_v21, %v252_v18 }
  0x3a   : > { %v261_v30 = vadd.f32 %v260_v22, %v259_v19  ;;  %v274_v31 = vrot.slane %v273_v25, 4  ;;  %v281_v33 = vrot.slane %v280_v26, 4  ;;  %v288_v34 = vrot.slane %v287_v27, 4 }
  0x3b   : > { %v268_v32 = vadd.f32 %v267_v24, %v266_v23  ;;  %v294_v35 = vsel %vm244_vm0, %v497_v15, 0.0  ;;  %v248_v36 = vrot.slane %v247_v28, 2  ;;  %v255_v37 = vrot.slane %v254_v29, 2 }
  0x3c   : > { %v262_v38 = vrot.slane %v261_v30, 2  ;;  %v275_v39 = vadd.f32 %v274_v31, %v273_v25  ;;  %v282_v41 = vadd.f32 %v281_v33, %v280_v26  ;;  %v289_v42 = vadd.f32 %v288_v34, %v287_v27 }
  0x3d   : > { %v269_v40 = vrot.slane %v268_v32, 2  ;;  %v295_v43 = vrot.slane %v294_v35, 4  ;;  %v249_v44 = vadd.f32 %v248_v36, %v247_v28  ;;  %v256_v45 = vadd.f32 %v255_v37, %v254_v29 }
  0x3e   : > { %v263_v46 = vadd.f32 %v262_v38, %v261_v30  ;;  %v276_v47 = vrot.slane %v275_v39, 2  ;;  %v283_v49 = vrot.slane %v282_v41, 2  ;;  %v290_v50 = vrot.slane %v289_v42, 2 }
  0x3f   : > { %v270_v48 = vadd.f32 %v269_v40, %v268_v32  ;;  %v296_v51 = vadd.f32 %v295_v43, %v294_v35  ;;  %v250_v52 = vrot.slane %v249_v44, 1  ;;  %v257_v53 = vrot.slane %v256_v45, 1 }
  0x40   : > { %v264_v54 = vrot.slane %v263_v46, 1  ;;  %v277_v55 = vadd.f32 %v276_v47, %v275_v39  ;;  %v284_v57 = vadd.f32 %v283_v49, %v282_v41  ;;  %v291_v58 = vadd.f32 %v290_v50, %v289_v42 }
  0x41   : > { %v271_v56 = vrot.slane %v270_v48, 1  ;;  %v297_v59 = vrot.slane %v296_v51, 2  ;;  %v251_v60 = vadd.f32 %v250_v52, %v249_v44  ;;  %v258_v61 = vadd.f32 %v257_v53, %v256_v45 }
  0x42   : > { %v265_v62 = vadd.f32 %v264_v54, %v263_v46  ;;  %v278_v63 = vrot.slane %v277_v55, 1  ;;  %v285_v2 = vrot.slane %v284_v57, 1  ;;  %v292_v3 = vrot.slane %v291_v58, 1 }
  0x43   : > { %v272_v0 = vadd.f32 %v271_v56, %v270_v48  ;;  %v298_v4 = vadd.f32 %v297_v59, %v296_v51  ;;  %v301_v7 = vmul.f32 0.125, %v251_v60  ;;  %v302_v8 = vmul.f32 0.125, %v258_v61 }
  0x44   : > { %v279_v6 = vadd.f32 %v278_v63, %v277_v55  ;;  %v303_v9 = vmul.f32 0.125, %v265_v62  ;;  %v286_v10 = vadd.f32 %v285_v2, %v284_v57  ;;  %v293_v11 = vadd.f32 %v292_v3, %v291_v58 }
  0x45   : > { %v299_v12 = vrot.slane %v298_v4, 1  ;;  %v304_v13 = vmul.f32 0.125, %v272_v0  ;;  %v312_v15 = vrot.slane %v243_v16, %v311_v5  ;;  %vm336_vm3 = vcmask 1043459  }
  0x46   : > { %v305_v14 = vmul.f32 0.125, %v279_v6  ;;  %v306_v18 = vmul.f32 0.125, %v286_v10  ;;  %v307_v19 = vmul.f32 0.125, %v293_v11  ;;  %vm339_vm4 = vcmask 1044484  }
  0x47   : > { %v300_v17 = vadd.f32 %v299_v12, %v298_v4  ;;  %v313_v20 = vmul.f32 %v312_v15, %v301_v7  ;;  %v314_v21 = vmul.f32 %v312_v15, %v302_v8  ;;  %v315_v22 = vmul.f32 %v312_v15, %v303_v9 }
  0x48   : > { %v316_v23 = vmul.f32 %v312_v15, %v304_v13  ;;  %v317_v25 = vmul.f32 %v312_v15, %v305_v14  ;;  %v318_v26 = vmul.f32 %v312_v15, %v306_v18  ;;  %v319_v27 = vmul.f32 %v312_v15, %v307_v19 }
  0x49   : > { %v308_v24 = vmul.f32 0.125, %v300_v17  ;;  %v329_v28 = vrot.slane %v314_v21, 7  ;;  %v332_v29 = vrot.slane %v315_v22, 6  ;;  %vm342_vm5 = vcmask 1045509  }
  0x4a   : > { %v335_v30 = vrot.slane %v316_v23, 5  ;;  %v338_v1 = vrot.slane %v317_v25, 4  ;;  %v341_v16 = vrot.slane %v318_v26, 3  ;;  %v344_v33 = vrot.slane %v319_v27, 2 }
  0x4b   : > { %v320_v31 = vmul.f32 %v312_v15, %v308_v24  ;;  %v331_v5 = vsel %vm330_vm1, %v329_v28, %v313_v20  ;;  %vm345_vm6 = vcmask 1046534   ;;  %vm348_vm7 = vcmask 1047559  }
  0x4c   : > { %v334_v32 = vsel %vm333_vm2, %v332_v29, %v331_v5  ;;  %v355_v41 = vstv %s354_s25  ;;  %vm357_vm8 = vcmask 7168   ;;  %vm378_vm9 = vcmask 0  }
  0x4d   : > { %v337_v34 = vsel %vm336_vm3, %v335_v30, %v334_v32  ;;  %v347_v35 = vrot.slane %v320_v31, 1 }
  0x4e   : > { %v340_v36 = vsel %vm339_vm4, %v338_v1, %v337_v34 }
  0x4f   : > { %v343_v37 = vsel %vm342_vm5, %v341_v16, %v340_v36 }
  0x50   : > { %v346_v38 = vsel %vm345_vm6, %v344_v33, %v343_v37 }
  0x51   : > { %v349_v39 = vsel %vm348_vm7, %v347_v35, %v346_v38 }
  0x52   : > { %v351_v40 = vsel %vm244_vm0, %v349_v39, 0.0 }
  0x53   : > { %352 = vadd.xlane.f32.xlu0 %v351_v40 }
  0xe0   : > { %v353_v42 = vpop.xlane.xlu0 %352 }
  0xe1   : > { %v356_v43 = vadd.f32 %v355_v41, %v353_v42 }
  0xe3   : > { %358 = vst.msk [vmem:[%s222_s10] sm:$0xff] %vm357_vm8, %v356_v43  ;;  %v359_v44 = vrot.slane %v356_v43, 4 }
  0xe5   : > { %v360_v45 = vmax.f32 %v356_v43, %v359_v44 }
  0xe7   : > { %v361_v46 = vrot.slane %v360_v45, 2 }
  0xe9   : > { %v362_v47 = vmax.f32 %v360_v45, %v361_v46 }
  0xeb   : > { %v363_v48 = vrot.slane %v362_v47, 1 }
  0xed   : > { %v364_v49 = vmax.f32 %v362_v47, %v363_v48 }
  0xef   : > { %v365_v50 = vsub.f32 %v356_v43, %v364_v49 }
  0xf1   : > { %v366_v51 = vmul.f32 1.442695, %v365_v50 }
  0xf3   : > { %542 = vpow2.f32 %v366_v51 }
  0xfd   : > { %v543_v52 = vpop.eup %542 }
  0xfe   : > { %v368_v53 = vrot.slane %v543_v52, 4 }
 0x100   : > { %v369_v54 = vadd.f32 %v543_v52, %v368_v53 }
 0x102   : > { %v370_v55 = vrot.slane %v369_v54, 2 }
 0x104   : > { %v371_v56 = vadd.f32 %v370_v55, %v369_v54 }
 0x106   : > { %v372_v57 = vrot.slane %v371_v56, 1 }
 0x108   : > { %v373_v58 = vadd.f32 %v372_v57, %v371_v56 }
 0x10a   : > { %544 = vlog2.f32 %v373_v58 }
 0x114   : > { %v545_v59 = vpop.eup %544 }
 0x115   : > { %v375_v60 = vmul.f32 0.6931472, %v545_v59 }
 0x117   : > { %v376_v61 = vadd.f32 %v375_v60, %v364_v49 }
 0x119   : > { %v377_v62 = vsub.f32 %v376_v61, %v356_v43 }
 0x11b   : > { %379 = vst.msk [vmem:[%s225_s13] sm:$0x1] %vm378_vm9, %v377_v62 }
 0x11c PF: > { %p16_p8 = scmp.ge.s32.totalorder %s665_s21, 4   ;;  %s787_s17 = smov %s602_s18 }
 0x11d   : > { %s788_s18 = smov %s606_s19  ;;  %s789_s19 = smov %s675_s24 }
 0x11e   : > { %s790_s20 = smov %s665_s21  ;;  %18 = sbr.rel (!%p16_p8) target bundleno = 5 (0x5), region = 84 }
 0x125   :  { %411 = vsyncpa [#allocation4], 1 }
 0x126   :  { %413 = vsyncpa [#allocation4 + $0x1], 1 }

</bundles_post_ra>
